<compile_context>
chip_gen: v7x
topology: tpu7x:2x2x1
jax: 0.10.0
libtpu: 0.0.40
codegen_flags: <defaults>
</compile_context>

<pallas_src>
import math
import functools

import jax
import jax.numpy as jnp
import numpy as np
from jax import lax
from jax.experimental import pallas as pl
from jax.experimental.pallas import tpu as pltpu


def _rmsnorm_f32(x, g, eps):
    # x: (S, E) f32, g: (1, E) f32
    ms = jnp.mean(x * x, axis=-1, keepdims=True)
    return x * lax.rsqrt(ms + eps) * g


def _tdot(a, b):
    # a @ b.T with f32 accumulation (rhs stored (out, in) / row-tiled).
    return lax.dot_general(a, b, (((1,), (1,)), ((), ())),
                           preferred_element_type=jnp.float32)


# --------------------------- kernel A: attention + residual ---------------------------
def attn_kernel(x_ref, bias_ref, cos_q_ref, sin_q_ref, cos_k_ref, sin_k_ref, g_ref,
                wqkv_ref, wo_ref,
                h_ref,
                xn_ref, acc_ref,
                *, group, head_dim, eps):
    f32 = jnp.float32
    cdt = xn_ref.dtype                     # bf16 compute dtype for MXU operands
    kvh = pl.program_id(1)
    gh = group * head_dim
    half = head_dim // 2

    @pl.when(kvh == 0)
    def _():
        x = x_ref[0].astype(f32)
        xn_ref[...] = _rmsnorm_f32(x, g_ref[...].astype(f32), eps).astype(cdt)
        acc_ref[...] = x                   # residual, kept in f32

    xn = xn_ref[...]                                            # (S, E) bf16

    # single fused projection for this kv head and its q-head group (bf16 MXU, f32 accum)
    qkv = _tdot(xn, wqkv_ref[...])                              # (S, gh + 2*hd) f32
    q = qkv[:, :gh]                                             # (S, gh)
    k = qkv[:, gh:gh + head_dim]                                # (S, hd)
    v16 = qkv[:, gh + head_dim:].astype(cdt)                    # (S, hd) bf16

    cq, sq = cos_q_ref[...], sin_q_ref[...]                     # (S, half) f32, pre-scaled
    ck, sk = cos_k_ref[...], sin_k_ref[...]                     # (S, half) f32

    def rope(t, c, s):
        # rotate-half on the de-interleaved layout (weights pre-permuted in the wrapper)
        t1, t2 = t[:, :half], t[:, half:]
        return jnp.concatenate([t1 * c - t2 * s, t2 * c + t1 * s], axis=-1)

    kr = rope(k, ck, sk).astype(cdt)                            # (S, hd) bf16
    bias = bias_ref[...]                                        # (S, S) f32 additive mask

    o_list = []
    for g in range(group):                                      # small static unroll
        qh = q[:, g * head_dim:(g + 1) * head_dim]
        qr = rope(qh, cq, sq).astype(cdt)                       # 1/sqrt(hd) folded into cq/sq
        s = _tdot(qr, kr) + bias                                # (S, S) f32
        s = s - jnp.max(s, axis=-1, keepdims=True)
        p = jnp.exp(s)
        inv_l = pl.reciprocal(jnp.sum(p, axis=-1, keepdims=True), approx=True)
        o_list.append(jnp.dot(p.astype(cdt), v16, preferred_element_type=jnp.float32) * inv_l)

    o_cat = jnp.concatenate(o_list, axis=-1).astype(cdt)        # (S, gh)
    acc_ref[...] += jnp.dot(o_cat, wo_ref[...], preferred_element_type=jnp.float32)

    @pl.when(kvh == pl.num_programs(1) - 1)
    def _():
        h_ref[0] = acc_ref[...].astype(h_ref.dtype)


# --------------------------- kernel B: SwiGLU FFN + residual ---------------------------
def ffn_kernel(h_ref, g_ref, w13_ref, w2_ref,
               out_ref,
               hn_ref, acc_ref,
               *, eps, f_tile):
    f32 = jnp.float32
    cdt = hn_ref.dtype
    t = pl.program_id(1)

    @pl.when(t == 0)
    def _():
        h = h_ref[0].astype(f32)
        hn_ref[...] = _rmsnorm_f32(h, g_ref[...].astype(f32), eps).astype(cdt)
        acc_ref[...] = h                   # residual

    hn = hn_ref[...]                                            # (S, E) bf16
    ab = _tdot(hn, w13_ref[...])                                # (S, 2*tf) f32 (w1|w3 fused)
    a = ab[:, :f_tile]
    b = ab[:, f_tile:]
    gated = (a * jax.nn.sigmoid(a) * b).astype(cdt)
    acc_ref[...] += jnp.dot(gated, w2_ref[...], preferred_element_type=f32)   # (S, E)

    @pl.when(t == pl.num_programs(1) - 1)
    def _():
        out_ref[0] = acc_ref[...].astype(out_ref.dtype)


# ------------------------------------ wrapper ------------------------------------
def decoder_layer_pallas(x, attention_mask, freqs_cis, params, *,
                         num_heads, num_kv_heads, eps=1e-5, f_tile=None):
    """params use the PyTorch nn.Linear layout (out_features, in_features)."""
    B, S, E = x.shape
    assert E % num_heads == 0 and num_heads % num_kv_heads == 0
    head_dim = E // num_heads
    assert head_dim % 2 == 0
    group = num_heads // num_kv_heads
    gh = group * head_dim
    half = head_dim // 2
    F = params["w1"].shape[0]
    if f_tile is None:
        f_tile = F if F <= 512 else 512
    assert F % f_tile == 0 and f_tile % 8 == 0

    cdt = jnp.bfloat16
    f32 = jnp.float32

    # --- rotary tables (only (S, head_dim/2)); fold 1/sqrt(hd) into the q tables ---
    cos = freqs_cis[..., 0].astype(f32)                         # (S, half)
    sin = freqs_cis[..., 1].astype(f32)
    scale = 1.0 / math.sqrt(head_dim)
    cos_q, sin_q = cos * scale, sin * scale
    cos_k, sin_k = cos, sin

    # --- attention mask -> finite additive bias (no NaN on fully masked rows) ---
    bias = jnp.where(attention_mask == 0, f32(-1e30), f32(0.0))

    # --- de-interleave q/k head dims so rotary == contiguous rotate-half, and pack
    #     [wq(group) ; wk ; wv] rows per kv head into a single weight slab.
    #     Scores are invariant: the same per-head permutation is applied to q and k. ---
    perm = np.concatenate([np.arange(0, head_dim, 2), np.arange(1, head_dim, 2)])
    blocks = []
    for h in range(num_kv_heads):
        q_rows = (np.arange(h * group, (h + 1) * group)[:, None] * head_dim
                  + perm[None, :]).reshape(-1)
        k_rows = h * head_dim + perm
        v_rows = h * head_dim + np.arange(head_dim)
        blocks.append(jnp.concatenate([params["wq"][q_rows],
                                       params["wk"][k_rows],
                                       params["wv"][v_rows]], axis=0))
    wqkv = jnp.concatenate(blocks, axis=0).astype(cdt)          # (KVH*(gh+2hd), E)
    qkv_rows = gh + 2 * head_dim

    wo = params["wo"].T.astype(cdt)                             # (E, E) (in, out): rows = head dims

    nt = F // f_tile
    w13 = jnp.concatenate([params["w1"].reshape(nt, f_tile, E),
                           params["w3"].reshape(nt, f_tile, E)],
                          axis=1).reshape(2 * F, E).astype(cdt) # packed (w1|w3) per F tile
    w2 = params["w2"].T.astype(cdt)                             # (F, E) (in, out): rows = F

    g_attn = params["g_attn"].reshape(1, E).astype(f32)
    g_ff = params["g_ff"].reshape(1, E).astype(f32)

    cparams = pltpu.CompilerParams(
        dimension_semantics=("parallel", "arbitrary"),
        vmem_limit_bytes=64 * 1024 * 1024)

    # ---- kernel A: attention + residual, grid over (batch, kv head) ----
    h = pl.pallas_call(
        functools.partial(attn_kernel, group=group, head_dim=head_dim, eps=eps),
        out_shape=jax.ShapeDtypeStruct((B, S, E), x.dtype),
        grid=(B, num_kv_heads),
        in_specs=[
            pl.BlockSpec((1, S, E), lambda b, h: (b, 0, 0)),        # x
            pl.BlockSpec((S, S), lambda b, h: (0, 0)),              # additive mask bias
            pl.BlockSpec((S, half), lambda b, h: (0, 0)),           # cos_q (pre-scaled)
            pl.BlockSpec((S, half), lambda b, h: (0, 0)),           # sin_q (pre-scaled)
            pl.BlockSpec((S, half), lambda b, h: (0, 0)),           # cos_k
            pl.BlockSpec((S, half), lambda b, h: (0, 0)),           # sin_k
            pl.BlockSpec((1, E), lambda b, h: (0, 0)),              # attn-norm gain
            pl.BlockSpec((qkv_rows, E), lambda b, h: (h, 0)),       # packed wq|wk|wv rows
            pl.BlockSpec((gh, E), lambda b, h: (h, 0)),             # wo rows for this kv group
        ],
        out_specs=pl.BlockSpec((1, S, E), lambda b, h: (b, 0, 0)),
        scratch_shapes=[pltpu.VMEM((S, E), cdt),                    # normalized x (bf16)
                        pltpu.VMEM((S, E), jnp.float32)],           # f32 accumulator
        compiler_params=cparams,
    )(x, bias, cos_q, sin_q, cos_k, sin_k, g_attn, wqkv, wo)

    # ---- kernel B: SwiGLU FFN + residual, grid over (batch, F tiles) ----
    out = pl.pallas_call(
        functools.partial(ffn_kernel, eps=eps, f_tile=f_tile),
        out_shape=jax.ShapeDtypeStruct((B, S, E), x.dtype),
        grid=(B, nt),
        in_specs=[
            pl.BlockSpec((1, S, E), lambda b, t: (b, 0, 0)),        # h (attn output)
            pl.BlockSpec((1, E), lambda b, t: (0, 0)),              # ff-norm gain
            pl.BlockSpec((2 * f_tile, E), lambda b, t: (t, 0)),     # packed w1|w3 F-tile
            pl.BlockSpec((f_tile, E), lambda b, t: (t, 0)),         # w2 F-tile (in, out)
        ],
        out_specs=pl.BlockSpec((1, S, E), lambda b, t: (b, 0, 0)),
        scratch_shapes=[pltpu.VMEM((S, E), cdt),
                        pltpu.VMEM((S, E), jnp.float32)],
        compiler_params=cparams,
    )(h, g_ff, w13, w2)
    return out


# ------------------------- pure-JAX f32 reference (module semantics) -------------------------
def reference_f32(x, mask, freqs_cis, params, num_heads, num_kv_heads, eps):
    B, S, E = x.shape
    hd = E // num_heads

    def rms(t, g):
        return t * lax.rsqrt(jnp.mean(t * t, -1, keepdims=True) + eps) * g

    def lin(t, w):            # nn.Linear: w is (out, in)
        return t @ w.T

    xn = rms(x, params["g_attn"])
    q = lin(xn, params["wq"])
    k = lin(xn, params["wk"])
    v = lin(xn, params["wv"])

    def rope(t, nh):
        ts = t.reshape(B, S, nh, hd // 2, 2)
        fc = freqs_cis.reshape(1, S, 1, hd // 2, 2)
        out = jnp.stack([ts[..., 0] * fc[..., 0] - ts[..., 1] * fc[..., 1],
                         ts[..., 1] * fc[..., 0] + ts[..., 0] * fc[..., 1]], -1)
        return out.reshape(B, S, nh, hd)

    q = rope(q, num_heads)
    k = rope(k, num_kv_heads)
    v = v.reshape(B, S, num_kv_heads, hd)
    q, k, v = (t.transpose(0, 2, 1, 3) for t in (q, k, v))
    rep = num_heads // num_kv_heads
    k = jnp.repeat(k, rep, axis=1)
    v = jnp.repeat(v, rep, axis=1)
    s = q @ k.transpose(0, 1, 3, 2) / math.sqrt(hd)
    s = jnp.where(mask[None, None] == 0, -jnp.inf, s)
    p = jax.nn.softmax(s, axis=-1)
    o = (p @ v).transpose(0, 2, 1, 3).reshape(B, S, E)
    h = x + lin(o, params["wo"])
    hn = rms(h, params["g_ff"])
    ff = lin(jax.nn.silu(lin(hn, params["w1"])) * lin(hn, params["w3"]), params["w2"])
    return h + ff


if __name__ == "__main__":
    B, S, E = 2, 8, 32
    num_heads, num_kv_heads = 4, 2
    hd = E // num_heads
    kv_dim = num_kv_heads * hd
    F = 64
    eps = 1e-5

    key = jax.random.PRNGKey(0)
    keys = jax.random.split(key, 9)

    def init(k, shape, fan_in):
        return jax.random.normal(k, shape, jnp.float32) / math.sqrt(fan_in)

    # PyTorch nn.Linear layout: (out_features, in_features)
    params = {
        "wq": init(keys[0], (E, E), E),
        "wk": init(keys[1], (kv_dim, E), E),
        "wv": init(keys[2], (kv_dim, E), E),
        "wo": init(keys[3], (E, E), E),
        "w1": init(keys[4], (F, E), E),
        "w3": init(keys[5], (F, E), E),
        "w2": init(keys[6], (E, F), F),
        "g_attn": jnp.ones((E,), jnp.float32),
        "g_ff": jnp.ones((E,), jnp.float32),
    }

    x = jax.random.normal(keys[7], (B, S, E), jnp.float32)
    # causal prefill mask (kv cache update with input_pos = arange(S) is the identity here)
    mask = jnp.tril(jnp.ones((S, S), jnp.float32))
    # llama-style rotary freqs_cis: (S, hd/2, 2) = stack(cos, sin)
    inv_freq = 1.0 / (10000.0 ** (jnp.arange(0, hd, 2, dtype=jnp.float32) / hd))
    angles = jnp.arange(S, dtype=jnp.float32)[:, None] * inv_freq[None, :]
    freqs_cis = jnp.stack([jnp.cos(angles), jnp.sin(angles)], axis=-1)

    out = decoder_layer_pallas(x, mask, freqs_cis, params,
                               num_heads=num_heads, num_kv_heads=num_kv_heads,
                               eps=eps, f_tile=32)
    out = jax.block_until_ready(out)

    ref = reference_f32(x, mask, freqs_cis, params, num_heads, num_kv_heads, eps)
    # bf16 MXU inputs with f32 accumulation vs. full-f32 reference -> loose tolerance
    np.testing.assert_allclose(np.asarray(out, dtype=np.float32), np.asarray(ref),
                               rtol=5e-2, atol=5e-2)
    print("KERNEL_OK")
</pallas_src>

<mosaic_0001>
module attributes {stable_mosaic.version = 11 : i64} {
  func.func @attn_kernel(%arg0: i32, %arg1: i32, %arg2: memref<1x8x32xf32, #tpu.memory_space<vmem>>, %arg3: memref<8x8xf32, #tpu.memory_space<vmem>>, %arg4: memref<8x4xf32, #tpu.memory_space<vmem>>, %arg5: memref<8x4xf32, #tpu.memory_space<vmem>>, %arg6: memref<8x4xf32, #tpu.memory_space<vmem>>, %arg7: memref<8x4xf32, #tpu.memory_space<vmem>>, %arg8: memref<1x32xf32, #tpu.memory_space<vmem>>, %arg9: memref<32x32xbf16, #tpu.memory_space<vmem>>, %arg10: memref<16x32xbf16, #tpu.memory_space<vmem>>, %arg11: memref<1x8x32xf32, #tpu.memory_space<vmem>>, %arg12: memref<8x32xbf16, #tpu.memory_space<vmem>>, %arg13: memref<8x32xf32, #tpu.memory_space<vmem>>) attributes {dimension_semantics = [#tpu.dimension_semantics<parallel>, #tpu.dimension_semantics<arbitrary>], iteration_bounds = array<i64: 2, 2>, scalar_prefetch = 0 : i64, scratch_operands = 2 : i64, tpu.core_type = #tpu.core_type<tc>, window_params = [{transform_indices = @transform_0, window_bounds = array<i64: 1, 8, 32>}, {pipeline_mode = #tpu.pipeline_mode<synchronous>, transform_indices = @transform_1, window_bounds = array<i64: 8, 8>}, {pipeline_mode = #tpu.pipeline_mode<synchronous>, transform_indices = @transform_2, window_bounds = array<i64: 8, 4>}, {pipeline_mode = #tpu.pipeline_mode<synchronous>, transform_indices = @transform_3, window_bounds = array<i64: 8, 4>}, {pipeline_mode = #tpu.pipeline_mode<synchronous>, transform_indices = @transform_4, window_bounds = array<i64: 8, 4>}, {pipeline_mode = #tpu.pipeline_mode<synchronous>, transform_indices = @transform_5, window_bounds = array<i64: 8, 4>}, {pipeline_mode = #tpu.pipeline_mode<synchronous>, transform_indices = @transform_6, window_bounds = array<i64: 1, 32>}, {transform_indices = @transform_7, window_bounds = array<i64: 32, 32>}, {transform_indices = @transform_8, window_bounds = array<i64: 16, 32>}, {transform_indices = @transform_9, window_bounds = array<i64: 1, 8, 32>}]} {
    %c0_i32 = arith.constant 0 : i32
    %0 = arith.cmpi eq, %arg1, %c0_i32 : i32
    %1 = arith.extui %0 : i1 to i32
    %c0_i32_0 = arith.constant 0 : i32
    %2 = arith.cmpi ne, %1, %c0_i32_0 : i32
    scf.if %2 {
      %c0_30 = arith.constant 0 : index
      %c0_31 = arith.constant 0 : index
      %c0_32 = arith.constant 0 : index
      %85 = vector.load %arg2[%c0_30, %c0_31, %c0_32] : memref<1x8x32xf32, #tpu.memory_space<vmem>>, vector<1x8x32xf32>
      %86 = vector.shape_cast %85 : vector<1x8x32xf32> to vector<8x32xf32>
      %c0_33 = arith.constant 0 : index
      %c0_34 = arith.constant 0 : index
      %87 = vector.load %arg8[%c0_33, %c0_34] : memref<1x32xf32, #tpu.memory_space<vmem>>, vector<1x32xf32>
      %88 = arith.mulf %86, %86 : vector<8x32xf32>
      %cst_35 = arith.constant dense<0.000000e+00> : vector<8xf32>
      %89 = vector.multi_reduction <add>, %88, %cst_35 [1] : vector<8x32xf32> to vector<8xf32>
      %90 = vector.shape_cast %89 : vector<8xf32> to vector<8x1xf32>
      %cst_36 = arith.constant 3.200000e+01 : f32
      %91 = vector.broadcast %cst_36 : f32 to vector<8x1xf32>
      %92 = arith.divf %90, %91 : vector<8x1xf32>
      %cst_37 = arith.constant 9.99999974E-6 : f32
      %93 = vector.broadcast %cst_37 : f32 to vector<8x1xf32>
      %94 = arith.addf %92, %93 : vector<8x1xf32>
      %95 = math.rsqrt %94 : vector<8x1xf32>
      %96 = vector.broadcast %95 : vector<8x1xf32> to vector<8x32xf32>
      %97 = arith.mulf %86, %96 : vector<8x32xf32>
      %98 = vector.broadcast %87 : vector<1x32xf32> to vector<8x32xf32>
      %99 = arith.mulf %97, %98 : vector<8x32xf32>
      %100 = arith.truncf %99 : vector<8x32xf32> to vector<8x32xbf16>
      %c0_38 = arith.constant 0 : index
      %c0_39 = arith.constant 0 : index
      %101 = vector.load %arg12[%c0_38, %c0_39] : memref<8x32xbf16, #tpu.memory_space<vmem>>, vector<8x32xbf16>
      tpu.vector_store %arg12[%c0_38, %c0_39], %100 {strides = array<i32>} : memref<8x32xbf16, #tpu.memory_space<vmem>>, vector<8x32xbf16>,
      %c0_40 = arith.constant 0 : index
      %c0_41 = arith.constant 0 : index
      %102 = vector.load %arg13[%c0_40, %c0_41] : memref<8x32xf32, #tpu.memory_space<vmem>>, vector<8x32xf32>
      tpu.vector_store %arg13[%c0_40, %c0_41], %86 {strides = array<i32>} : memref<8x32xf32, #tpu.memory_space<vmem>>, vector<8x32xf32>,
    } else {
    }
    %c0 = arith.constant 0 : index
    %c0_1 = arith.constant 0 : index
    %3 = vector.load %arg12[%c0, %c0_1] : memref<8x32xbf16, #tpu.memory_space<vmem>>, vector<8x32xbf16>
    %c0_2 = arith.constant 0 : index
    %c0_3 = arith.constant 0 : index
    %4 = vector.load %arg9[%c0_2, %c0_3] : memref<32x32xbf16, #tpu.memory_space<vmem>>, vector<32x32xbf16>
    %cst = arith.constant dense<0.000000e+00> : vector<8x32xf32>
    %5 = tpu.matmul %3, %4, %cst {dimension_numbers = #tpu.dot_dimension_numbers<[1], [1], [0], [0], [0, 0, 1, 0], [], []>} : vector<8x32xbf16>, vector<32x32xbf16>, vector<8x32xf32> -> vector<8x32xf32>
    %6 = vector.extract_strided_slice %5 {offsets = [0, 0], sizes = [8, 16], strides = [1, 1]} : vector<8x32xf32> to vector<8x16xf32>
    %7 = vector.extract_strided_slice %5 {offsets = [0, 16], sizes = [8, 8], strides = [1, 1]} : vector<8x32xf32> to vector<8x8xf32>
    %8 = vector.extract_strided_slice %5 {offsets = [0, 24], sizes = [8, 8], strides = [1, 1]} : vector<8x32xf32> to vector<8x8xf32>
    %9 = arith.truncf %8 : vector<8x8xf32> to vector<8x8xbf16>
    %c0_4 = arith.constant 0 : index
    %c0_5 = arith.constant 0 : index
    %10 = vector.load %arg4[%c0_4, %c0_5] : memref<8x4xf32, #tpu.memory_space<vmem>>, vector<8x4xf32>
    %c0_6 = arith.constant 0 : index
    %c0_7 = arith.constant 0 : index
    %11 = vector.load %arg5[%c0_6, %c0_7] : memref<8x4xf32, #tpu.memory_space<vmem>>, vector<8x4xf32>
    %c0_8 = arith.constant 0 : index
    %c0_9 = arith.constant 0 : index
    %12 = vector.load %arg6[%c0_8, %c0_9] : memref<8x4xf32, #tpu.memory_space<vmem>>, vector<8x4xf32>
    %c0_10 = arith.constant 0 : index
    %c0_11 = arith.constant 0 : index
    %13 = vector.load %arg7[%c0_10, %c0_11] : memref<8x4xf32, #tpu.memory_space<vmem>>, vector<8x4xf32>
    %14 = vector.extract_strided_slice %7 {offsets = [0, 0], sizes = [8, 4], strides = [1, 1]} : vector<8x8xf32> to vector<8x4xf32>
    %15 = vector.extract_strided_slice %7 {offsets = [0, 4], sizes = [8, 4], strides = [1, 1]} : vector<8x8xf32> to vector<8x4xf32>
    %16 = arith.mulf %14, %12 : vector<8x4xf32>
    %17 = arith.mulf %15, %13 : vector<8x4xf32>
    %18 = arith.subf %16, %17 : vector<8x4xf32>
    %19 = arith.mulf %15, %12 : vector<8x4xf32>
    %20 = arith.mulf %14, %13 : vector<8x4xf32>
    %21 = arith.addf %19, %20 : vector<8x4xf32>
    %22 = tpu.concatenate %18, %21 in 1 : vector<8x4xf32>, vector<8x4xf32> -> vector<8x8xf32>
    %23 = arith.truncf %22 : vector<8x8xf32> to vector<8x8xbf16>
    %c0_12 = arith.constant 0 : index
    %c0_13 = arith.constant 0 : index
    %24 = vector.load %arg3[%c0_12, %c0_13] : memref<8x8xf32, #tpu.memory_space<vmem>>, vector<8x8xf32>
    %25 = vector.extract_strided_slice %6 {offsets = [0, 0], sizes = [8, 8], strides = [1, 1]} : vector<8x16xf32> to vector<8x8xf32>
    %26 = vector.extract_strided_slice %25 {offsets = [0, 0], sizes = [8, 4], strides = [1, 1]} : vector<8x8xf32> to vector<8x4xf32>
    %27 = vector.extract_strided_slice %25 {offsets = [0, 4], sizes = [8, 4], strides = [1, 1]} : vector<8x8xf32> to vector<8x4xf32>
    %28 = arith.mulf %26, %10 : vector<8x4xf32>
    %29 = arith.mulf %27, %11 : vector<8x4xf32>
    %30 = arith.subf %28, %29 : vector<8x4xf32>
    %31 = arith.mulf %27, %10 : vector<8x4xf32>
    %32 = arith.mulf %26, %11 : vector<8x4xf32>
    %33 = arith.addf %31, %32 : vector<8x4xf32>
    %34 = tpu.concatenate %30, %33 in 1 : vector<8x4xf32>, vector<8x4xf32> -> vector<8x8xf32>
    %35 = arith.truncf %34 : vector<8x8xf32> to vector<8x8xbf16>
    %cst_14 = arith.constant dense<0.000000e+00> : vector<8x8xf32>
    %36 = tpu.matmul %35, %23, %cst_14 {dimension_numbers = #tpu.dot_dimension_numbers<[1], [1], [0], [0], [0, 0, 1, 0], [], []>} : vector<8x8xbf16>, vector<8x8xbf16>, vector<8x8xf32> -> vector<8x8xf32>
    %37 = arith.addf %36, %24 : vector<8x8xf32>
    %cst_15 = arith.constant dense<0xFF800000> : vector<8xf32>
    %38 = vector.multi_reduction <maximumf>, %37, %cst_15 [1] : vector<8x8xf32> to vector<8xf32>
    %39 = vector.shape_cast %38 : vector<8xf32> to vector<8x1xf32>
    %40 = vector.broadcast %39 : vector<8x1xf32> to vector<8x8xf32>
    %41 = arith.subf %37, %40 : vector<8x8xf32>
    %42 = math.exp %41 : vector<8x8xf32>
    %cst_16 = arith.constant dense<0.000000e+00> : vector<8xf32>
    %43 = vector.multi_reduction <add>, %42, %cst_16 [1] : vector<8x8xf32> to vector<8xf32>
    %44 = vector.shape_cast %43 : vector<8xf32> to vector<8x1xf32>
    %45 = tpu.reciprocal %44 {approx = true} : vector<8x1xf32> -> vector<8x1xf32>
    %46 = arith.truncf %42 : vector<8x8xf32> to vector<8x8xbf16>
    %cst_17 = arith.constant dense<0.000000e+00> : vector<8x8xf32>
    %47 = tpu.matmul %46, %9, %cst_17 {dimension_numbers = #tpu.dot_dimension_numbers<[1], [0], [0], [1], [0, 0, 1, 1], [], []>} : vector<8x8xbf16>, vector<8x8xbf16>, vector<8x8xf32> -> vector<8x8xf32>
    %48 = vector.broadcast %45 : vector<8x1xf32> to vector<8x8xf32>
    %49 = arith.mulf %47, %48 : vector<8x8xf32>
    %50 = vector.extract_strided_slice %6 {offsets = [0, 8], sizes = [8, 8], strides = [1, 1]} : vector<8x16xf32> to vector<8x8xf32>
    %51 = vector.extract_strided_slice %50 {offsets = [0, 0], sizes = [8, 4], strides = [1, 1]} : vector<8x8xf32> to vector<8x4xf32>
    %52 = vector.extract_strided_slice %50 {offsets = [0, 4], sizes = [8, 4], strides = [1, 1]} : vector<8x8xf32> to vector<8x4xf32>
    %53 = arith.mulf %51, %10 : vector<8x4xf32>
    %54 = arith.mulf %52, %11 : vector<8x4xf32>
    %55 = arith.subf %53, %54 : vector<8x4xf32>
    %56 = arith.mulf %52, %10 : vector<8x4xf32>
    %57 = arith.mulf %51, %11 : vector<8x4xf32>
    %58 = arith.addf %56, %57 : vector<8x4xf32>
    %59 = tpu.concatenate %55, %58 in 1 : vector<8x4xf32>, vector<8x4xf32> -> vector<8x8xf32>
    %60 = arith.truncf %59 : vector<8x8xf32> to vector<8x8xbf16>
    %cst_18 = arith.constant dense<0.000000e+00> : vector<8x8xf32>
    %61 = tpu.matmul %60, %23, %cst_18 {dimension_numbers = #tpu.dot_dimension_numbers<[1], [1], [0], [0], [0, 0, 1, 0], [], []>} : vector<8x8xbf16>, vector<8x8xbf16>, vector<8x8xf32> -> vector<8x8xf32>
    %62 = arith.addf %61, %24 : vector<8x8xf32>
    %cst_19 = arith.constant dense<0xFF800000> : vector<8xf32>
    %63 = vector.multi_reduction <maximumf>, %62, %cst_19 [1] : vector<8x8xf32> to vector<8xf32>
    %64 = vector.shape_cast %63 : vector<8xf32> to vector<8x1xf32>
    %65 = vector.broadcast %64 : vector<8x1xf32> to vector<8x8xf32>
    %66 = arith.subf %62, %65 : vector<8x8xf32>
    %67 = math.exp %66 : vector<8x8xf32>
    %cst_20 = arith.constant dense<0.000000e+00> : vector<8xf32>
    %68 = vector.multi_reduction <add>, %67, %cst_20 [1] : vector<8x8xf32> to vector<8xf32>
    %69 = vector.shape_cast %68 : vector<8xf32> to vector<8x1xf32>
    %70 = tpu.reciprocal %69 {approx = true} : vector<8x1xf32> -> vector<8x1xf32>
    %71 = arith.truncf %67 : vector<8x8xf32> to vector<8x8xbf16>
    %cst_21 = arith.constant dense<0.000000e+00> : vector<8x8xf32>
    %72 = tpu.matmul %71, %9, %cst_21 {dimension_numbers = #tpu.dot_dimension_numbers<[1], [0], [0], [1], [0, 0, 1, 1], [], []>} : vector<8x8xbf16>, vector<8x8xbf16>, vector<8x8xf32> -> vector<8x8xf32>
    %73 = vector.broadcast %70 : vector<8x1xf32> to vector<8x8xf32>
    %74 = arith.mulf %72, %73 : vector<8x8xf32>
    %75 = tpu.concatenate %49, %74 in 1 : vector<8x8xf32>, vector<8x8xf32> -> vector<8x16xf32>
    %76 = arith.truncf %75 : vector<8x16xf32> to vector<8x16xbf16>
    %c0_22 = arith.constant 0 : index
    %c0_23 = arith.constant 0 : index
    %77 = vector.load %arg13[%c0_22, %c0_23] : memref<8x32xf32, #tpu.memory_space<vmem>>, vector<8x32xf32>
    %c0_24 = arith.constant 0 : index
    %c0_25 = arith.constant 0 : index
    %78 = vector.load %arg10[%c0_24, %c0_25] : memref<16x32xbf16, #tpu.memory_space<vmem>>, vector<16x32xbf16>
    %cst_26 = arith.constant dense<0.000000e+00> : vector<8x32xf32>
    %79 = tpu.matmul %76, %78, %cst_26 {dimension_numbers = #tpu.dot_dimension_numbers<[1], [0], [0], [1], [0, 0, 1, 1], [], []>} : vector<8x16xbf16>, vector<16x32xbf16>, vector<8x32xf32> -> vector<8x32xf32>
    %80 = arith.addf %77, %79 : vector<8x32xf32>
    %c0_27 = arith.constant 0 : index
    %c0_28 = arith.constant 0 : index
    %81 = vector.load %arg13[%c0_27, %c0_28] : memref<8x32xf32, #tpu.memory_space<vmem>>, vector<8x32xf32>
    tpu.vector_store %arg13[%c0_27, %c0_28], %80 {strides = array<i32>} : memref<8x32xf32, #tpu.memory_space<vmem>>, vector<8x32xf32>,
    %c1_i32 = arith.constant 1 : i32
    %82 = arith.cmpi eq, %arg1, %c1_i32 : i32
    %83 = arith.extui %82 : i1 to i32
    %c0_i32_29 = arith.constant 0 : i32
    %84 = arith.cmpi ne, %83, %c0_i32_29 : i32
    scf.if %84 {
      %c0_30 = arith.constant 0 : index
      %c0_31 = arith.constant 0 : index
      %85 = vector.load %arg13[%c0_30, %c0_31] : memref<8x32xf32, #tpu.memory_space<vmem>>, vector<8x32xf32>
      %c0_32 = arith.constant 0 : index
      %c0_33 = arith.constant 0 : index
      %c0_34 = arith.constant 0 : index
      %86 = vector.load %arg11[%c0_32, %c0_33, %c0_34] : memref<1x8x32xf32, #tpu.memory_space<vmem>>, vector<1x8x32xf32>
      %87 = vector.shape_cast %86 : vector<1x8x32xf32> to vector<8x32xf32>
      %88 = vector.shape_cast %85 : vector<8x32xf32> to vector<1x8x32xf32>
      tpu.vector_store %arg11[%c0_32, %c0_33, %c0_34], %88 {strides = array<i32>} : memref<1x8x32xf32, #tpu.memory_space<vmem>>, vector<1x8x32xf32>,
    } else {
    }
    return
  }
  func.func @transform_0(%arg0: i32, %arg1: i32) -> (i32, i32, i32) {
    %c0_i32 = arith.constant 0 : i32
    %c0_i32_0 = arith.constant 0 : i32
    %c0_i32_1 = arith.constant 0 : i32
    return %arg0, %c0_i32, %c0_i32_0 : i32, i32, i32
  }
  func.func @transform_1(%arg0: i32, %arg1: i32) -> (i32, i32) {
    %c0_i32 = arith.constant 0 : i32
    %c0_i32_0 = arith.constant 0 : i32
    %c0_i32_1 = arith.constant 0 : i32
    return %c0_i32, %c0_i32_0 : i32, i32
  }
  func.func @transform_2(%arg0: i32, %arg1: i32) -> (i32, i32) {
    %c0_i32 = arith.constant 0 : i32
    %c0_i32_0 = arith.constant 0 : i32
    %c0_i32_1 = arith.constant 0 : i32
    return %c0_i32, %c0_i32_0 : i32, i32
  }
  func.func @transform_3(%arg0: i32, %arg1: i32) -> (i32, i32) {
    %c0_i32 = arith.constant 0 : i32
    %c0_i32_0 = arith.constant 0 : i32
    %c0_i32_1 = arith.constant 0 : i32
    return %c0_i32, %c0_i32_0 : i32, i32
  }
  func.func @transform_4(%arg0: i32, %arg1: i32) -> (i32, i32) {
    %c0_i32 = arith.constant 0 : i32
    %c0_i32_0 = arith.constant 0 : i32
    %c0_i32_1 = arith.constant 0 : i32
    return %c0_i32, %c0_i32_0 : i32, i32
  }
  func.func @transform_5(%arg0: i32, %arg1: i32) -> (i32, i32) {
    %c0_i32 = arith.constant 0 : i32
    %c0_i32_0 = arith.constant 0 : i32
    %c0_i32_1 = arith.constant 0 : i32
    return %c0_i32, %c0_i32_0 : i32, i32
  }
  func.func @transform_6(%arg0: i32, %arg1: i32) -> (i32, i32) {
    %c0_i32 = arith.constant 0 : i32
    %c0_i32_0 = arith.constant 0 : i32
    %c0_i32_1 = arith.constant 0 : i32
    return %c0_i32, %c0_i32_0 : i32, i32
  }
  func.func @transform_7(%arg0: i32, %arg1: i32) -> (i32, i32) {
    %c0_i32 = arith.constant 0 : i32
    %c0_i32_0 = arith.constant 0 : i32
    return %arg1, %c0_i32 : i32, i32
  }
  func.func @transform_8(%arg0: i32, %arg1: i32) -> (i32, i32) {
    %c0_i32 = arith.constant 0 : i32
    %c0_i32_0 = arith.constant 0 : i32
    return %arg1, %c0_i32 : i32, i32
  }
  func.func @transform_9(%arg0: i32, %arg1: i32) -> (i32, i32, i32) {
    %c0_i32 = arith.constant 0 : i32
    %c0_i32_0 = arith.constant 0 : i32
    %c0_i32_1 = arith.constant 0 : i32
    return %arg0, %c0_i32, %c0_i32_0 : i32, i32, i32
  }
}

</mosaic_0001>

<bundles_post_ra>
// kernel: tpu_custom_call.1
= control target key start
LH: loop header
LB: loop body
LE: loop exit
PB: predicated region body
PF: predicated region fallthrough
CT: control target
= control target key end

     0   :  { %s2536_s0 = inlined_call_operand.hbm [shape: f32[2,8,32], index: 0, kind: input, shape index: {}]   ;;  %s2537_s1 = inlined_call_operand.hbm [shape: f32[8,8], index: 1, kind: input, shape index: {}]   ;;  %s2538_s2 = inlined_call_operand.hbm [shape: f32[8,4], index: 2, kind: input, shape index: {}]   ;;  %s2539_s3 = inlined_call_operand.hbm [shape: f32[8,4], index: 3, kind: input, shape index: {}]   ;;  %s2540_s4 = inlined_call_operand.hbm [shape: f32[8,4], index: 4, kind: input, shape index: {}]   ;;  %s2541_s5 = inlined_call_operand.hbm [shape: f32[8,4], index: 5, kind: input, shape index: {}]   ;;  %s2542_s6 = inlined_call_operand.hbm [shape: f32[1,32], index: 6, kind: input, shape index: {}]   ;;  %s2543_s7 = inlined_call_operand.hbm [shape: bf16[64,32], index: 7, kind: input, shape index: {}]   ;;  %s2544_s8 = inlined_call_operand.hbm [shape: bf16[32,32], index: 8, kind: input, shape index: {}]   ;;  %s2545_s9 = inlined_call_operand.hbm [shape: f32[2,8,32], index: 9, kind: output, shape index: {}]  }
   0x1   :  { %2569 = sst [smem:[#allocation35_spill]] %s2536_s0 }
   0x2   :  { %2570 = sst [smem:[#allocation36_spill]] %s2537_s1 }
   0x3   :  { %2571 = sst [smem:[#allocation37_spill]] %s2538_s2 }
   0x4   :  { %2572 = sst [smem:[#allocation38_spill]] %s2539_s3 }
   0x5   :  { %2573 = sst [smem:[#allocation39_spill]] %s2540_s4 }
   0x6   :  { %2574 = sst [smem:[#allocation40_spill]] %s2541_s5 }
   0x7   :  { %2575 = sst [smem:[#allocation41_spill]] %s2542_s6 }
   0x8   :  { %2576 = sst [smem:[#allocation42_spill]] %s2543_s7 }
   0x9   :  { %2577 = sst [smem:[#allocation43_spill]] %s2544_s8 }
   0xa   :  { %2578 = sst [smem:[#allocation44_spill]] %s2545_s9 }
   0xb   :  { %14 = vsyncpa [#allocation5], 0 }
   0xc   :  { %16 = vsyncpa [#allocation5 + $0x1], 0 }
   0xd   :  { %17 = vsyncpa [#allocation8], 0 }
   0xe   :  { %18 = vsyncpa [#allocation11], 0 }
   0xf   :  { %19 = vsyncpa [#allocation14], 0 }
  0x10   :  { %20 = vsyncpa [#allocation17], 0 }
  0x11   :  { %22 = vsyncpa [#allocation17 + $0x1], 0 }
  0x12   :  { %23 = vsyncpa [#allocation6], 0 }
  0x13   :  { %25 = vsyncpa [#allocation6 + $0x1], 0  ;;  %s1959_s30 = smov 0   ;;  %s1961_s10 = smov 0  }
  0x14   :  { %s1963_s11 = smov 0   ;;  %s1965_s12 = smov 0  }
  0x15   :  { %s1967_s13 = smov 0   ;;  %s1969_s14 = smov 0  }
  0x16   :  { %s1971_s15 = smov 0   ;;  %s1973_s16 = smov 0  }
  0x17   :  { %s1975_s17 = smov 0   ;;  %s1977_s18 = smov 0  }
  0x18   :  { %s1979_s19 = smov 0  }
  0x19 LB: > { %2579 = sst [smem:[#allocation26_spill]] %s1868_s15  ;;  %s2015_s20 = sadd.s32 4294967295, %s1884_s19   ;;  %s1884_s19 = sphi %s1979_s19, %s31_s19   ;;  %s1880_s18 = sphi %s1977_s18, %s2640_s18   ;;  %s1876_s17 = sphi %s1975_s17, %s2639_s17   ;;  %s1872_s16 = sphi %s1973_s16, %s2647_s16   ;;  %s1868_s15 = sphi %s1971_s15, %s2637_s15   ;;  %s1864_s14 = sphi %s1969_s14, %s2646_s14   ;;  %s1860_s13 = sphi %s1967_s13, %s2645_s13   ;;  %s1856_s12 = sphi %s1965_s12, %s2644_s12   ;;  %s1852_s11 = sphi %s1963_s11, %s2643_s11   ;;  %s1848_s10 = sphi %s1961_s10, %s2642_s10   ;;  %s1844_s30 = sphi %s1959_s30, %s2641_s30  }
  0x1a   : > { %2580 = sst [smem:[#allocation27_spill]] %s1872_s16  ;;  %p1183_p0 = scmp.ge.s32.totalorder %s1884_s19, 1 }
  0x1b   : > { %2581 = sst [smem:[#allocation28_spill]] %s1876_s17  ;;  %p2548_p1 = scmp.eq.s32.totalorder %s2015_s20, 0 }
  0x1c   : > { %2582 = sst [smem:[#allocation29_spill]] %s1880_s18  ;;  %p278_p2 = scmp.lt.s32.totalorder %s1884_s19, 5 }
  0x1d   : > { %s1886_s22 = smov [#allocation7]   ;;  %s1887_s24 = smov [#allocation10]  }
  0x1e   : > { %p2020_p3 = pnand %p1183_p0, %p278_p2  ;;  %s291_s23 = sshll.u32 %s1886_s22, 4  ;;  %s292_s23 = int_to_ptr.vmem [resolvable:$true] %s291_s23 }
  0x1f   : > { %s313_s25 = sshll.u32 %s1887_s24, 4  ;;  %s1888_s27 = smov [#allocation13]   ;;  %s2032_s25 = int_to_ptr.vmem [resolvable:$true] %s313_s25 }
  0x20   : > { %s2583_s21 = scalar_select %p2020_p3, 1, 0 }
  0x21   : > { %p1311_p4 = pneg %p2020_p3  ;;  %s335_s28 = sshll.u32 %s1888_s27, 4  ;;  %s2034_s28 = int_to_ptr.vmem [resolvable:$true] %s335_s28 }
  0x22   : > { %2584 = sst [smem:[#allocation30_spill]] %s2583_s21 }
  0x23   : > { %p2028_p5 = pnand %p1311_p4, %p2548_p1  ;;  %s2586_s1 = sld [smem:[#allocation36_spill]] }
  0x25   : > { %s2585_s26 = scalar_select %p2028_p5, 1, 0 }
  0x26   : > { %p2044_p7 = pneg %p2028_p5 }
  0x29   : > { %s1488_s22 = scalar_lea.hbm %s2586_s1, 128 }
  0x2a   : > { %p1489_p6 = scmp.ne.s32.totalorder %s2586_s1, %s1488_s22  ;;  %p1495_p10 = scmp.lt.u32.totalorder %s1488_s22, %s2586_s1 }
  0x2c   : > { %p1491_p8 = pnand %p2044_p7, %p1489_p6 }
  0x2e   : > { %p1492_p9 = pneg %p1491_p8 }
  0x30   : > { %p1497_p11 = pnand %p1495_p10, %p1492_p9 }
  0x32   : > { %1500 = shalt.err (!%p1497_p11)
}
  0x33   : > { %s1501_s9 = scalar_lea.vmem %s292_s23, 128  ;;  %p1509_p2 = scmp.lt.s32.totalorder %s292_s23, %s292_s23 }
  0x34   : > { %p1502_p12 = scmp.ne.s32.totalorder %s292_s23, %s1501_s9  ;;  %p1510_p4 = scmp.lt.s32.totalorder %s1501_s9, %s1501_s9 }
  0x36   : > { %p1504_p13 = pnand %p1502_p12, %p2044_p7  ;;  %p1511_p1 = por %p1510_p4, %p1509_p2 }
  0x38   : > { %p1505_p0 = pneg %p1504_p13 }
  0x3a   : > { %p1512_p3 = pnand %p1511_p1, %p1505_p0 }
  0x3c   : > { %1515 = shalt.err (!%p1512_p3)
}
  0x3d   : > { %1314 = dma.hbm_to_vmem [thread:$0]  (!%p2028_p5), %s2586_s1, 128, %s292_s23, [#allocation8]  }
  0x3e   : > { %s2588_s3 = sld [smem:[#allocation38_spill]] }
  0x44   : > { %s1516_s22 = scalar_lea.hbm %s2588_s3, 128 }
  0x45   : > { %p1517_p6 = scmp.ne.s32.totalorder %s2588_s3, %s1516_s22  ;;  %p1523_p1 = scmp.lt.u32.totalorder %s1516_s22, %s2588_s3 }
  0x47   : > { %p1519_p8 = pnand %p1517_p6, %p2044_p7 }
  0x49   : > { %p1520_p9 = pneg %p1519_p8 }
  0x4b   : > { %p1525_p3 = pnand %p1523_p1, %p1520_p9 }
  0x4d   : > { %1528 = shalt.err (!%p1525_p3)
}
  0x4e   : > { %s1529_s23 = scalar_lea.vmem %s2032_s25, 128  ;;  %p1537_p13 = scmp.lt.s32.totalorder %s2032_s25, %s2032_s25 }
  0x4f   : > { %p1530_p10 = scmp.ne.s32.totalorder %s2032_s25, %s1529_s23  ;;  %p1538_p0 = scmp.lt.s32.totalorder %s1529_s23, %s1529_s23 }
  0x51   : > { %p1532_p11 = pnand %p1530_p10, %p2044_p7  ;;  %p1539_p2 = por %p1538_p0, %p1537_p13 }
  0x53   : > { %p1533_p12 = pneg %p1532_p11 }
  0x55   : > { %p1540_p4 = pnand %p1539_p2, %p1533_p12 }
  0x57   : > { %1543 = shalt.err (!%p1540_p4)
}
  0x58   : > { %1320 = dma.hbm_to_vmem [thread:$0]  (!%p2028_p5), %s2588_s3, 128, %s2032_s25, [#allocation11]  }
  0x59   : > { %s2589_s5 = sld [smem:[#allocation40_spill]] }
  0x5f   : > { %s1544_s21 = scalar_lea.hbm %s2589_s5, 128 }
  0x60   : > { %p1545_p6 = scmp.ne.s32.totalorder %s2589_s5, %s1544_s21  ;;  %p1551_p1 = scmp.lt.u32.totalorder %s1544_s21, %s2589_s5 }
  0x62   : > { %p1547_p8 = pnand %p1545_p6, %p2044_p7 }
  0x64   : > { %p1548_p9 = pneg %p1547_p8 }
  0x66   : > { %p1553_p3 = pnand %p1551_p1, %p1548_p9 }
  0x68   : > { %1556 = shalt.err (!%p1553_p3)
}
  0x69   : > { %s1557_s25 = scalar_lea.vmem %s2034_s28, 128  ;;  %p1565_p13 = scmp.lt.s32.totalorder %s2034_s28, %s2034_s28 }
  0x6a   : > { %p1558_p10 = scmp.ne.s32.totalorder %s2034_s28, %s1557_s25  ;;  %p1566_p0 = scmp.lt.s32.totalorder %s1557_s25, %s1557_s25 }
  0x6c   : > { %p1560_p11 = pnand %p1558_p10, %p2044_p7  ;;  %p1567_p2 = por %p1566_p0, %p1565_p13 }
  0x6e   : > { %p1561_p12 = pneg %p1560_p11 }
  0x70   : > { %p1568_p4 = pnand %p1567_p2, %p1561_p12 }
  0x72   : > { %1571 = shalt.err (!%p1568_p4)
}
  0x73   : > { %1326 = dma.hbm_to_vmem [thread:$0]  (!%p2028_p5), %s2589_s5, 128, %s2034_s28, [#allocation14]  }
  0x74   : > { %p2553_p6 = scmp.eq.s32.totalorder %s1884_s19, 0  ;;  %p209_p8 = scmp.ne.s32.totalorder %s1852_s11, %s1848_s10 }
  0x75   : > { %p215_p9 = scmp.ne.s32.totalorder %s1848_s10, %s1844_s30  ;;  %p2552_p1 = scmp.lt.s32.totalorder %s1884_s19, 4 }
  0x76   : > { %s375_s16 = sand.u32 1, %s1884_s19   ;;  %p211_p3 = por %p209_p8, %p2553_p6 }
  0x77   : > { %p2590_p10 = scmp.eq.s32.totalorder %s2015_s20, 0  ;;  %s377_s29 = sand.u32 1, %s1852_s11  }
  0x78   : > { %s1193_s22 = sshll.u32 %s377_s29, 4  ;;  %s1226_s27 = sshll.u32 %s1876_s17, 8 }
  0x79   : > { %p2119_p11 = por %p215_p9, %p2590_p10  ;;  %s2593_s7 = sld [smem:[#allocation42_spill]] }
  0x7a   : > { %s379_s30 = scalar_lea.vmem [#allocation16], %s1193_s22  ;;  %p2134_p12 = pnand %p2552_p1, %p211_p3 }
  0x7b   : > { %s2591_s21 = scalar_select %p2119_p11, 1, 0 }
  0x7c   : > { %s386_s23 = sshll.u32 %s379_s30, 4  ;;  %s2140_s15 = scalar_lea.sflag [#allocation17], %s375_s16  ;;  %s2138_s23 = int_to_ptr.vmem [resolvable:$true] %s386_s23 }
  0x7d   : > { %2592 = sst [smem:[#allocation31_spill]] %s2591_s21  ;;  %p2559_p0 = pneg %p2134_p12 }
  0x7e   : > { %s2594_s0 = scalar_select %p2134_p12, 1, 0 }
  0x7f   : > { %s2130_s25 = scalar_lea.hbm %s2593_s7, %s1226_s27  ;;  %s1577_s9 = scalar_lea.hbm %s2593_s7, 512 }
  0x80   : > { %s1572_s28 = scalar_lea.hbm %s2130_s25, 256  ;;  %p1578_p8 = scmp.lt.u32.totalorder %s2130_s25, %s2593_s7 }
  0x81   : > { %p1573_p13 = scmp.ne.s32.totalorder %s2130_s25, %s1572_s28  ;;  %p1579_p9 = scmp.lt.u32.totalorder %s1577_s9, %s1572_s28 }
  0x82   : > { %p1581_p10 = scmp.lt.u32.totalorder %s1572_s28, %s2130_s25 }
  0x83   : > { %p1575_p2 = pnand %p2559_p0, %p1573_p13  ;;  %p1580_p3 = por %p1579_p9, %p1578_p8 }
  0x85   : > { %p1576_p4 = pneg %p1575_p2  ;;  %p1582_p1 = por %p1581_p10, %p1580_p3 }
  0x87   : > { %p1583_p6 = pnand %p1582_p1, %p1576_p4 }
  0x89   : > { %1586 = shalt.err (!%p1583_p6)
}
  0x8a   : > { %s1587_s16 = scalar_lea.vmem %s2138_s23, 256  ;;  %s1889_s22 = smov [#allocation16]  }
  0x8b   : > { %p1588_p13 = scmp.ne.s32.totalorder %s2138_s23, %s1587_s16  ;;  %s1592_s27 = sshll.u32 %s1889_s22, 4  ;;  %s1593_s27 = int_to_ptr.vmem [resolvable:$false] %s1592_s27 }
  0x8c   : > { %s1594_s8 = scalar_lea.vmem %s1593_s27, 512  ;;  %p1595_p5 = scmp.lt.s32.totalorder %s2138_s23, %s1593_s27 }
  0x8d   : > { %p1590_p2 = pnand %p1588_p13, %p2559_p0  ;;  %p1596_p8 = scmp.lt.s32.totalorder %s1594_s8, %s1587_s16 }
  0x8f   : > { %p1591_p11 = pneg %p1590_p2  ;;  %p1597_p9 = por %p1596_p8, %p1595_p5 }
  0x91   : > { %p1598_p3 = pnand %p1597_p9, %p1591_p11 }
  0x93   : > { %1601 = shalt.err (!%p1598_p3)
}
  0x94   : > { %s2562_s28 = smov 64   ;;  %s2563_s9 = smov 4  }
  0x95   : > { %1336 = dma.hbm_to_vmem [thread:$0]  (!%p2134_p12), %s2130_s25, 256, %s2138_s23, %s2140_s15, %s2562_s28, %s2562_s28, %s2563_s9  }
  0x96   : > { %s1196_s30 = sshll.u32 %s377_s29, 3  ;;  %s1892_s22 = smov [#allocation9]  }
  0x97   : > { %s302_s16 = sshll.u32 %s1892_s22, 4  ;;  %s400_s27 = scalar_lea.vmem [#allocation18], %s1196_s30  ;;  %s303_s16 = int_to_ptr.vmem [resolvable:$true] %s302_s16 }
  0x98   : > { %s2173_s8 = sshll.u32 %s400_s27, 4  ;;  %s2595_s2 = sld [smem:[#allocation37_spill]]  ;;  %s2311_s8 = int_to_ptr.vmem [resolvable:$true] %s2173_s8 }
  0x9e   : > { %s1602_s5 = scalar_lea.hbm %s2595_s2, 128 }
  0x9f   : > { %p1603_p5 = scmp.ne.s32.totalorder %s2595_s2, %s1602_s5  ;;  %p1609_p11 = scmp.lt.u32.totalorder %s1602_s5, %s2595_s2 }
  0xa1   : > { %p1605_p6 = pnand %p1603_p5, %p2044_p7 }
  0xa3   : > { %p1606_p1 = pneg %p1605_p6 }
  0xa5   : > { %p1611_p4 = pnand %p1609_p11, %p1606_p1 }
  0xa7   : > { %1614 = shalt.err (!%p1611_p4)
}
  0xa8   : > { %s1615_s29 = scalar_lea.vmem %s303_s16, 128  ;;  %p1623_p8 = scmp.lt.s32.totalorder %s303_s16, %s303_s16 }
  0xa9   : > { %p1616_p10 = scmp.ne.s32.totalorder %s303_s16, %s1615_s29  ;;  %p1624_p9 = scmp.lt.s32.totalorder %s1615_s29, %s1615_s29 }
  0xab   : > { %p1618_p13 = pnand %p1616_p10, %p2044_p7  ;;  %p1625_p3 = por %p1624_p9, %p1623_p8 }
  0xad   : > { %p1619_p2 = pneg %p1618_p13 }
  0xaf   : > { %p1626_p0 = pnand %p1625_p3, %p1619_p2 }
  0xb1   : > { %1629 = shalt.err (!%p1626_p0)
}
  0xb2   : > { %p2596_p5 = scmp.ne.s32.totalorder %s2585_s26, 0  ;;  %s1893_s5 = smov [#allocation12]  }
  0xb3   : > { %s324_s7 = sshll.u32 %s1893_s5, 4  ;;  %s1894_s21 = smov [#allocation15]   ;;  %s325_s7 = int_to_ptr.vmem [resolvable:$true] %s324_s7 }
  0xb4   : > { %1317 = dma.hbm_to_vmem [thread:$0]  (!%p2596_p5), %s2595_s2, 128, %s303_s16, [#allocation8]  }
  0xb5   : > { %s346_s30 = sshll.u32 %s1894_s21, 4  ;;  %s2597_s4 = sld [smem:[#allocation39_spill]]  ;;  %s2193_s30 = int_to_ptr.vmem [resolvable:$true] %s346_s30 }
  0xbb   : > { %s1630_s25 = scalar_lea.hbm %s2597_s4, 128 }
  0xbc   : > { %p1631_p0 = scmp.ne.s32.totalorder %s2597_s4, %s1630_s25  ;;  %p1637_p11 = scmp.lt.u32.totalorder %s1630_s25, %s2597_s4 }
  0xbe   : > { %p1633_p6 = pnand %p1631_p0, %p2044_p7 }
  0xc0   : > { %p1634_p1 = pneg %p1633_p6 }
  0xc2   : > { %p1639_p4 = pnand %p1637_p11, %p1634_p1 }
  0xc4   : > { %1642 = shalt.err (!%p1639_p4)
}
  0xc5   : > { %s1643_s3 = scalar_lea.vmem %s325_s7, 128  ;;  %p1651_p8 = scmp.lt.s32.totalorder %s325_s7, %s325_s7 }
  0xc6   : > { %p1644_p10 = scmp.ne.s32.totalorder %s325_s7, %s1643_s3  ;;  %p1652_p9 = scmp.lt.s32.totalorder %s1643_s3, %s1643_s3 }
  0xc8   : > { %p1646_p13 = pnand %p1644_p10, %p2044_p7  ;;  %p1653_p3 = por %p1652_p9, %p1651_p8 }
  0xca   : > { %p1647_p2 = pneg %p1646_p13 }
  0xcc   : > { %p1654_p12 = pnand %p1653_p3, %p1647_p2 }
  0xce   : > { %1657 = shalt.err (!%p1654_p12)
}
  0xcf   : > { %1323 = dma.hbm_to_vmem [thread:$0]  (!%p2596_p5), %s2597_s4, 128, %s325_s7, [#allocation11]  }
  0xd0   : > { %s2598_s6 = sld [smem:[#allocation41_spill]] }
  0xd6   : > { %s1658_s25 = scalar_lea.hbm %s2598_s6, 16 }
  0xd7   : > { %p1659_p0 = scmp.ne.s32.totalorder %s2598_s6, %s1658_s25  ;;  %p1665_p12 = scmp.lt.u32.totalorder %s1658_s25, %s2598_s6 }
  0xd9   : > { %p1661_p6 = pnand %p1659_p0, %p2044_p7 }
  0xdb   : > { %p1662_p1 = pneg %p1661_p6 }
  0xdd   : > { %p1667_p11 = pnand %p1665_p12, %p1662_p1 }
  0xdf   : > { %1670 = shalt.err (!%p1667_p11)
}
  0xe0   : > { %s1671_s7 = scalar_lea.vmem %s2193_s30, 16  ;;  %s1678_s3 = scalar_lea.vmem %s2193_s30, 32 }
  0xe1   : > { %p1672_p4 = scmp.ne.s32.totalorder %s2193_s30, %s1671_s7  ;;  %p1679_p2 = scmp.lt.s32.totalorder %s2193_s30, %s2193_s30 }
  0xe2   : > { %p1680_p8 = scmp.lt.s32.totalorder %s1678_s3, %s1671_s7 }
  0xe3   : > { %p1674_p10 = pnand %p1672_p4, %p2044_p7 }
  0xe4   : > { %p1681_p9 = por %p1680_p8, %p1679_p2 }
  0xe5   : > { %p1675_p13 = pneg %p1674_p10 }
  0xe7   : > { %p1682_p3 = pnand %p1681_p9, %p1675_p13 }
  0xe9   : > { %1685 = shalt.err (!%p1682_p3)
}
  0xea   : > { %1329 = dma.hbm_to_vmem [thread:$0]  (!%p2596_p5), %s2598_s6, 16, %s2193_s30, [#allocation14]  }
  0xeb   : > { %s1182_s26 = sadd.s32 4294967294, %s1884_s19   ;;  %s2599_s24 = sadd.s32 1, %s1876_s17 }
  0xec   : > { %p41_p7 = scmp.ge.s32.totalorder %s2599_s24, 2  ;;  %s43_s22 = sadd.s32 1, %s1880_s18 }
  0xed   : > { %s50_s27 = sadd.s32 1, %s1864_s14  ;;  %s2600_s25 = smov %s2599_s24 }
  0xee   : > { %s2649_s25 = smov (%p41_p7, %s2600_s25), 0  ;;  %s2651_s22 = smov (!%p41_p7, %s43_s22), %s1880_s18 }
  0xef   : > { %2601 = sst [smem:[#allocation32_spill]] %s2649_s25  ;;  %p57_p0 = scmp.ne.s32.totalorder %s1864_s14, %s1860_s13 }
  0xf0   : > { %p63_p6 = scmp.ne.s32.totalorder %s1860_s13, %s1856_s12  ;;  %p45_p5 = scmp.ge.s32.totalorder %s2651_s22, 2 }
  0xf1   : > { %s199_s30 = ssub.s32 %s1876_s17, %s2649_s25  ;;  %p2602_p1 = scmp.eq.s32.totalorder %s1884_s19, 0 }
  0xf2   : > { %p2604_p11 = scmp.eq.s32.totalorder %s2015_s20, 0  ;;  %s2653_s22 = smov (%p45_p5, %s2651_s22), 0 }
  0xf3   : > { %p2255_p12 = por %p2602_p1, %p57_p0  ;;  %2606 = sst [smem:[#allocation33_spill]] %s2653_s22 }
  0xf4   : > { %p2264_p4 = por %p2604_p11, %p63_p6  ;;  %p200_p10 = scmp.eq.s32.totalorder %s199_s30, 0 }
  0xf5   : > { %p265_p13 = scmp.eq.s32.totalorder %s2015_s20, 3  ;;  %s47_s1 = ssub.s32 %s1880_s18, %s2653_s22 }
  0xf6   : > { %p271_p2 = scmp.eq.s32.totalorder %s1182_s26, 3  ;;  %p48_p8 = scmp.eq.s32.totalorder %s47_s1, 0 }
  0xf7   : > { %p2273_p9 = por %p265_p13, %p57_p0  ;;  %s2608_s7 = sadd.s32 1, %s1852_s11 }
  0xf8   : > { %s2280_s3 = scalar_select %p200_p10, %s1852_s11, %s2608_s7  }
  0xf9   : > { %s2607_s16 = scalar_select %p2273_p9, 1, 0 }
  0xfa   : > { %s2283_s5 = scalar_select %p48_p8, %s1864_s14, %s50_s27  }
  0xfb   : > { %p2288_p3 = por %p271_p2, %p63_p6  ;;  %s357_s24 = sand.u32 1, %s1864_s14  }
  0xfc   : > { %2609 = sst [smem:[#allocation34_spill]] %s2283_s5  ;;  %s1191_s30 = sshll.u32 %s357_s24, 3 }
  0xfd   : > { %s2610_s21 = scalar_select %p2288_p3, 1, 0 }
  0xfe   : > { %s1192_s28 = sshll.u32 %s1880_s18, 7  ;;  %s2611_s1 = sld [smem:[#allocation35_spill]] }
  0xff   : > { %s361_s7 = scalar_lea.vmem [#allocation4], %s1191_s30  ;;  %p2612_p7 = scmp.lt.s32.totalorder %s1884_s19, 4 }
 0x100   : > { %s368_s4 = sshll.u32 %s361_s7, 4  ;;  %s1227_s6 = sshll.u32 %s1876_s17, 7  ;;  %s2299_s4 = int_to_ptr.vmem [resolvable:$true] %s368_s4 }
 0x101   : > { %p2305_p0 = pnand %p2612_p7, %p2255_p12  ;;  %s2614_s26 = sld [smem:[#allocation43_spill]] }
 0x102   : > { %s358_s30 = scalar_lea.sflag [#allocation5], %s357_s24 }
 0x103   : > { %p1688_p5 = pneg %p2305_p0 }
 0x104   : > { %s2297_s2 = scalar_lea.hbm %s2611_s1, %s1192_s28  ;;  %s1691_s18 = scalar_lea.hbm %s2611_s1, 256 }
 0x105   : > { %s1686_s7 = scalar_lea.hbm %s2297_s2, 128  ;;  %p1692_p11 = scmp.lt.u32.totalorder %s2297_s2, %s2611_s1 }
 0x106   : > { %p1687_p6 = scmp.ne.s32.totalorder %s2297_s2, %s1686_s7  ;;  %p1693_p10 = scmp.lt.u32.totalorder %s1691_s18, %s1686_s7 }
 0x107   : > { %s2316_s22 = scalar_lea.hbm %s2614_s26, %s1227_s6  ;;  %p1695_p2 = scmp.lt.u32.totalorder %s1686_s7, %s2297_s2 }
 0x108   : > { %p1689_p1 = pnand %p1688_p5, %p1687_p6  ;;  %p1694_p13 = por %p1693_p10, %p1692_p11 }
 0x10a   : > { %p1690_p12 = pneg %p1689_p1  ;;  %p1696_p8 = por %p1695_p2, %p1694_p13 }
 0x10c   : > { %p1697_p7 = pnand %p1696_p8, %p1690_p12 }
 0x10e   : > { %1700 = shalt.err (!%p1697_p7)
}
 0x10f   : > { %s1701_s6 = scalar_lea.vmem %s2299_s4, 128  ;;  %s1895_s25 = smov [#allocation4]  }
 0x110   : > { %p1702_p6 = scmp.ne.s32.totalorder %s2299_s4, %s1701_s6  ;;  %s1706_s24 = sshll.u32 %s1895_s25, 4  ;;  %s1707_s24 = int_to_ptr.vmem [resolvable:$false] %s1706_s24 }
 0x111   : > { %s1708_s17 = scalar_lea.vmem %s1707_s24, 256  ;;  %p1709_p9 = scmp.lt.s32.totalorder %s2299_s4, %s1707_s24 }
 0x112   : > { %p1704_p1 = pnand %p1702_p6, %p1688_p5  ;;  %p1710_p11 = scmp.lt.s32.totalorder %s1708_s17, %s1701_s6 }
 0x114   : > { %p1705_p3 = pneg %p1704_p1  ;;  %p1711_p10 = por %p1710_p11, %p1709_p9 }
 0x116   : > { %p1712_p13 = pnand %p1711_p10, %p1705_p3 }
 0x118   : > { %1715 = shalt.err (!%p1712_p13)
}
 0x119   : > { %1333 = dma.hbm_to_vmem [thread:$0]  (!%p2305_p0), %s2297_s2, 128, %s2299_s4, %s358_s30  }
 0x11a   : > { %s1716_s18 = scalar_lea.hbm %s2316_s22, 128  ;;  %p2615_p12 = scmp.ne.s32.totalorder %s2594_s0, 0 }
 0x11b   : > { %p1717_p5 = scmp.ne.s32.totalorder %s2316_s22, %s1716_s18  ;;  %s1721_s9 = scalar_lea.hbm %s2614_s26, 256 }
 0x11c   : > { %p2616_p2 = pneg %p2615_p12  ;;  %p1722_p9 = scmp.lt.u32.totalorder %s2316_s22, %s2614_s26 }
 0x11d   : > { %p1723_p3 = scmp.lt.u32.totalorder %s1721_s9, %s1716_s18  ;;  %p1725_p1 = scmp.lt.u32.totalorder %s1716_s18, %s2316_s22 }
 0x11e   : > { %p1719_p8 = pnand %p1717_p5, %p2616_p2 }
 0x11f   : > { %p1724_p6 = por %p1723_p3, %p1722_p9 }
 0x120   : > { %p1720_p7 = pneg %p1719_p8 }
 0x121   : > { %p1726_p11 = por %p1725_p1, %p1724_p6 }
 0x123   : > { %p1727_p10 = pnand %p1726_p11, %p1720_p7 }
 0x125   : > { %1730 = shalt.err (!%p1727_p10)
}
 0x126   : > { %s1731_s2 = scalar_lea.vmem %s2311_s8, 128  ;;  %p2617_p13 = pmov %p2616_p2 }
 0x127   : > { %p1732_p0 = scmp.ne.s32.totalorder %s2311_s8, %s1731_s2  ;;  %s1896_s4 = smov [#allocation18]  }
 0x128   : > { %s1736_s30 = sshll.u32 %s1896_s4, 4  ;;  %s1737_s30 = int_to_ptr.vmem [resolvable:$false] %s1736_s30 }
 0x129   : > { %p1734_p5 = pnand %p1732_p0, %p2617_p13  ;;  %s1738_s23 = scalar_lea.vmem %s1737_s30, 256 }
 0x12a   : > { %p1739_p8 = scmp.lt.s32.totalorder %s2311_s8, %s1737_s30  ;;  %p1740_p9 = scmp.lt.s32.totalorder %s1738_s23, %s1731_s2 }
 0x12b   : > { %p1735_p2 = pneg %p1734_p5 }
 0x12c   : > { %p1741_p3 = por %p1740_p9, %p1739_p8 }
 0x12e   : > { %p1742_p6 = pnand %p1741_p3, %p1735_p2 }
 0x130   : > { %1745 = shalt.err (!%p1742_p6)
}
 0x131   : > { %s2618_s6 = smov 4   ;;  %s2619_s25 = smov 64  }
 0x132   : > { %1339 = dma.hbm_to_vmem [thread:$0]  (!%p2615_p12), %s2316_s22, 128, %s2311_s8, %s2140_s15, %s2619_s25, %s2619_s25, %s2618_s6  }
 0x133   : > { %s2620_s24 = sld [smem:[#allocation30_spill]] }
 0x139   : > { %p2621_p7 = scmp.ne.s32.totalorder %s2620_s24, 0 }
 0x13a   : > { %s2373_s17 = sand.u32 (!%p2621_p7), 1, %s1860_s13  }
 0x13b   : > { %419 = sbr.rel (%p2621_p7) target bundleno = 1959 (0x7a7), region = 56  ;;  %s1200_s18 = sshll.u32 (!%p2621_p7), %s2373_s17, 3 }
 0x13c   : > { %s422_s5 = scalar_lea.sflag (!%p2621_p7), [#allocation5], %s2373_s17  ;;  %s425_s28 = scalar_lea.vmem (!%p2621_p7), [#allocation4], %s1200_s18 }
 0x142   : > { %1819 = dma.done.wait (%p2264_p4), %s422_s5, 128  }
 0x143   : > { %1821 = vsyncadd (%p2264_p4), %s422_s5, 4294967168  ;;  %p2622_p1 = scmp.eq.s32.totalorder %s2015_s20, 0 }
 0x145   : > { %1823 = dma.done.wait (%p2622_p1), [#allocation8], 256   ;;  %p2623_p12 = pmov %p2622_p1 }
 0x146   : > { %p2624_p11 = pmov %p2622_p1 }
 0x147   : > { %1825 = vsyncadd (%p2623_p12), [#allocation8], 4294967040 }
 0x148   : > { %1827 = dma.done.wait (%p2624_p11), [#allocation11], 256   ;;  %p2625_p10 = pmov %p2622_p1 }
 0x149   : > { %p2626_p0 = pmov %p2622_p1 }
 0x14a   : > { %1829 = vsyncadd (%p2625_p10), [#allocation11], 4294967040 }
 0x14b   : > { %1831 = dma.done.wait (%p2626_p0), [#allocation14], 144   ;;  %p2627_p13 = pmov %p2626_p0 }
 0x14c   : > { %s2628_s15 = sld [smem:[#allocation31_spill]]  ;;  %s454_s0 = sand.u32 1, %s2015_s20  }
 0x14d   : > { %1833 = vsyncadd (%p2627_p13), [#allocation14], 4294967152  ;;  %s456_s8 = sand.u32 1, %s1848_s10   ;;  %s455_s29 = scalar_lea.sflag [#allocation17], %s454_s0 }
 0x14e   : > { %s2395_s22 = sshll.u32 %s456_s8, 4 }
 0x14f   : > { %s458_s9 = scalar_lea.vmem [#allocation16], %s2395_s22 }
 0x152   : > { %p2629_p4 = scmp.ne.s32.totalorder %s2628_s15, 0 }
 0x154   : > { %1835 = dma.done.wait (%p2629_p4), %s455_s29, 384  }
 0x155   : > { %1837 = vsyncadd (%p2629_p4), %s455_s29, 4294966912  ;;  %s2402_s7 = sshll.u32 %s456_s8, 3  ;;  %s2405_s2 = scalar_lea.vmem [#allocation19], %s1200_s18 }
 0x156   : > { %s467_s27 = scalar_lea.vmem [#allocation18], %s2402_s7  ;;  %s2630_s4 = sld [smem:[#allocation26_spill]] }
 0x15c   : > { %p1210_p5 = scmp.ne.s32.totalorder %s2630_s4, 0 }
 0x15d   : > { %v519_v0 = vld [vmem:[%s425_s28] sm:$0xff] (!%p1210_p5)  ;;  %vm522_vm0 = vcmask (!%p1210_p5), 261120   ;;  %v1211_v7 = vld [vmem:[#allocation15] ss:$0 sm:$0xff] (!%p1210_p5)  ;;  %vm539_vm1 = vcmask (!%p1210_p5), 257024  }
 0x15e   : > { %518 = sbr.rel (%p1210_p5) target bundleno = 517 (0x205), region = 96  ;;  %v521_v1 = vmul.f32 (!%p1210_p5), %v519_v0, %v519_v0  ;;  %541 = vst.msk [vmem:[#allocation3] sm:$0xff] (!%p1210_p5), %vm522_vm0, %v519_v0 }
 0x160   : > { %v523_v2 = vsel (!%p1210_p5), %vm522_vm0, %v521_v1, 0.0 }
 0x161   : > { %524 = vadd.xlane.f32.xlu0 (!%p1210_p5), %v523_v2 }
 0x1ee   : > { %v525_v3 = vpop.xlane.xlu0 %524 }
 0x1ef   : > { %v527_v4 = vmul.f32 0.03125, %v525_v3 }
 0x1f1   : > { %v528_v5 = vadd.f32 1e-05, %v527_v4 }
 0x1f3   : > { %1465 = vrsqrt.f32 %v528_v5 }
 0x1fd   : > { %v1466_v6 = vpop.eup %1465 }
 0x1fe   : > { %v530_v8 = vmul.f32 %v1466_v6, %v519_v0 }
 0x200   : > { %v537_v9 = vmul.f32 %v1211_v7, %v530_v8 }
 0x202   : > { %v538_v10 = vpack.c.bf16 %v537_v9, %v537_v9 }
 0x204   : > { %540 = vst.msk [vmem:[#allocation2] sm:$0xf] %vm539_vm1, %v538_v10 }
 0x205 PF: > { %v1477_v11 = vld [vmem:[%s458_s9] sm:$0xff]   ;;  %v1897_v12 = vmov 0.0   ;;  %vm557_vm2 = vcmask 261120   ;;  %vm1898_vm3 = vmmov 0   ;;  %v1478_v16 = vld [vmem:[%s458_s9 + $0x8] sm:$0xff]   ;;  %s1899_s20 = smov 20  }
 0x206   : > { %1241 = vmatprep.subr.bf16.mxu0 %v1897_v12  ;;  %1249 = vmatprep.subr.bf16.mxu1 %v1897_v12  ;;  %v562_v13 = vsel %vm557_vm2, %v1477_v11, 0  ;;  %v611_v14 = vld [vmem:[#allocation13] sm:$0xff]  ;;  %v609_v15 = vld [vmem:[#allocation10] sm:$0xff]  ;;  %s1900_s30 = smov 12   ;;  %v565_v17 = vsel %vm557_vm2, %v1478_v16, 0  ;;  %s1901_s23 = smov 16  }
 0x207   : > { %1242 = vmatpush3.bf16.xpose.msra.mxu0 %v562_v13  ;;  %1245 = vmatprep.mubr.msk.bf16.mxu0 %vm1898_vm3, %v1897_v12  ;;  %s1902_s6 = smov 8   ;;  %v610_v18 = vld [vmem:[#allocation12] sm:$0xff]  ;;  %v608_v21 = vld [vmem:[#allocation9] sm:$0xff]  ;;  %s1903_s25 = smov 4   ;;  %vm648_vm4 = vcmask 31744   ;;  %vm676_vm5 = vcmask 64512  }
 0x208   : > { %1243 = vmatprep.subr.bf16.mxu0 %v1897_v12  ;;  %618 = vrot.lane.b32.xlu0 %v611_v14, %s1899_s20  ;;  %s1904_s24 = smov 124   ;;  %s1905_s18 = smov 112   ;;  %v651_v10 = vld [vmem:[#allocation7] sm:$0xff]  ;;  %vm740_vm6 = vcmask 1043456   ;;  %vm934_vm7 = vcmask 130048  }
 0x209   : > { %789 = vrot.lane.b32.xlu1 %v609_v15, %s1900_s30  ;;  %1251 = vmatprep.mubr.msk.bf16.mxu1 %vm1898_vm3, %v1897_v12  ;;  %s1906_s5 = smov 120   ;;  %s1907_s28 = smov 104  }
 0x20a   : > { %s2631_s15 = sld [smem:[#allocation26_spill]] }
 0x20b   : > { %v542_v19 = vld [vmem:[#allocation2] sm:$0xf] }
 0x20c   : > { %631 = vrot.lane.b32.xlu0 %v611_v14, %s1901_s23 }
 0x20d   : > { %802 = vrot.lane.b32.xlu1 %v609_v15, %s1902_s6 }
 0x20f   : > { %1244 = vmatpush3.bf16.xpose.msra.mxu0 %v565_v17 }
 0x210   : > { %613 = vrot.lane.b32.xlu0 %v610_v18, %s1901_s23  ;;  %1261 = vmatprep.subr.bf16.mxu0 %v1897_v12  ;;  %p1221_p2 = scmp.ne.s32.totalorder %s2631_s15, 1 }
 0x211   : > { %627 = vrot.lane.b32.xlu1 %v610_v18, %s1899_s20 }
 0x216   : > { %1246 = vmatmul.mubr.msk.bf16.vlgmr.msra.gmra.mrb[0].mxu0 %vm557_vm2, %v542_v19 }
 0x217   : > { %1263 = vmatprep.mubr.msk.bf16.mxu0 %vm1898_vm3, %v1897_v12 }
 0x27a   : > { %v619_v20 = vpop.permute.xlu0 %618 }
 0x27b   : > { %v790_v30 = vpop.permute.xlu1 %789 }
 0x27e   : > { %v632_v22 = vpop.permute.xlu0 %631 }
 0x27f   : > { %v803_v32 = vpop.permute.xlu1 %802 }
 0x282   : > { %v614_v35 = vpop.permute.xlu0 %613 }
 0x283   : > { %v628_v36 = vpop.permute.xlu1 %627 }
 0x2e9   : > { %v2427_v23 = vpop.f32.mrb[0].mxu0 }
 0x2ea   : > { %v1247_v24 = vpop.f32.mrb[1].mxu0  ;;  %v634_v25 = vmul.f32 %v632_v22, %v2427_v23  ;;  %v621_v26 = vmul.f32 %v619_v20, %v2427_v23  ;;  %v652_v28 = vmul.f32 %v608_v21, %v2427_v23  ;;  %v792_v31 = vmul.f32 %v790_v30, %v2427_v23 }
 0x2eb   : > { %v604_v27 = vpop.f32.mrb[2].mxu0  ;;  %v805_v33 = vmul.f32 %v803_v32, %v2427_v23  ;;  %v668_v34 = vmul.f32 %v609_v15, %v2427_v23  ;;  %v630_v37 = vmul.f32 %v628_v36, %v2427_v23  ;;  %v616_v38 = vmul.f32 %v614_v35, %v2427_v23 }
 0x2ec   : > { %636 = vrot.lane.b32.xlu1 %v634_v25, %s1903_s25  ;;  %623 = vrot.lane.b32.xlu0 %v621_v26, %s1904_s24  ;;  %v1248_v29 = vpop.f32.mrb[3].mxu0  ;;  %v607_v25 = vpack.c.bf16 %v2427_v23, %v2427_v23 }
 0x2f0   : > { %785 = vrot.lane.b32.xlu1 %v608_v21, %s1902_s6  ;;  %654 = vrot.lane.b32.xlu0 %v609_v15, %s1903_s25 }
 0x2f4   : > { %794 = vrot.lane.b32.xlu1 %v792_v31, %s1904_s24  ;;  %798 = vrot.lane.b32.xlu0 %v608_v21, %s1900_s30 }
 0x2f8   : > { %807 = vrot.lane.b32.xlu0 %v805_v33, %s1903_s25 }
 0x2fc   : > { %664 = vrot.lane.b32.xlu0 %v608_v21, %s1903_s25 }
 0x300   : > { %670 = vrot.lane.b32.xlu0 %v668_v34, %s1903_s25 }
 0x35e   : > { %v637_v39 = vpop.permute.xlu1 %636  ;;  %v624_v40 = vpop.permute.xlu0 %623 }
 0x35f   : > { %v639_v41 = vadd.f32 %v637_v39, %v630_v37  ;;  %v626_v42 = vsub.f32 %v616_v38, %v624_v40  ;;  %v1479_v39 = vld [vmem:[%s467_s27] sm:$0xff]  }
 0x361   : > { %v1467_v43 = vpack.i.bf16 %v639_v41, %v626_v42 }
 0x362   : > { %v786_v44 = vpop.permute.xlu1 %785  ;;  %v655_v45 = vpop.permute.xlu0 %654 }
 0x363   : > { %1468 = vrot.lane.b32.xlu1 %v1467_v43, %s1905_s18  ;;  %v657_v46 = vmul.f32 %v655_v45, %v2427_v23  ;;  %v788_v49 = vmul.f32 %v786_v44, %v2427_v23 }
 0x366   : > { %v799_v47 = vpop.permute.xlu0 %798  ;;  %v795_v48 = vpop.permute.xlu1 %794 }
 0x367   : > { %659 = vrot.lane.b32.xlu1 %v657_v46, %s1904_s24  ;;  %v801_v50 = vmul.f32 %v799_v47, %v2427_v23  ;;  %v797_v52 = vsub.f32 %v788_v49, %v795_v48 }
 0x36a   : > { %v808_v51 = vpop.permute.xlu0 %807 }
 0x36b   : > { %v810_v53 = vadd.f32 %v808_v51, %v801_v50 }
 0x36d   : > { %v1472_v54 = vpack.i.bf16 %v810_v53, %v797_v52 }
 0x36e   : > { %v665_v55 = vpop.permute.xlu0 %664 }
 0x36f   : > { %1473 = vrot.lane.b32.xlu1 %v1472_v54, %s1906_s5  ;;  %v667_v60 = vmul.f32 %v665_v55, %v2427_v23 }
 0x372   : > { %v671_v59 = vpop.permute.xlu0 %670 }
 0x373   : > { %v673_v0 = vadd.f32 %v671_v59, %v667_v60 }
 0x3d5   : > { %v1469_v56 = vpop.permute.xlu1 %1468 }
 0x3d6   : > { %v1471_v57 = vunpack.i.h.bf16 %v1469_v56  ;;  %v1470_v58 = vunpack.i.l.bf16 %v1469_v56  ;;  %v925_v56 = vld [vmem:[#allocation3] sm:$0xff] }
 0x3d8   : > { %v649_v61 = vsel %vm648_vm4, %v1470_v58, %v1471_v57 }
 0x3d9   : > { %v660_v62 = vpop.permute.xlu1 %659  ;;  %v650_v63 = vpack.c.bf16 %v649_v61, %v649_v61 }
 0x3da   : > { %v662_v1 = vsub.f32 %v652_v28, %v660_v62 }
 0x3db   : > { %v681_v2 = vsel %vm676_vm5, %v650_v63, 0 }
 0x3dc   : > { %v674_v3 = vsel %vm648_vm4, %v662_v1, %v673_v0  ;;  %1250 = vmatpush3.bf16.xpose.msra.mxu1 %v681_v2  ;;  %1262 = vmatpush3.bf16.xpose.msra.mxu0 %v681_v2 }
 0x3dd   : > { %1255 = vmatprep.subr.bf16.mxu1 %v1897_v12  ;;  %1273 = vmatprep.subr.bf16.mxu0 %v1897_v12  ;;  %v675_v4 = vpack.c.bf16 %v674_v3, %v674_v3 }
 0x3e1   : > { %v1474_v5 = vpop.permute.xlu1 %1473 }
 0x3e2   : > { %v1476_v6 = vunpack.i.h.bf16 %v1474_v5  ;;  %v1475_v7 = vunpack.i.l.bf16 %v1474_v5 }
 0x3e3   : > { %1252 = vmatmul.mubr.msk.bf16.vlgmr.msra.gmra.mrb[0].mxu1 %vm676_vm5, %v675_v4 }
 0x3e4   : > { %v819_v8 = vsel %vm648_vm4, %v1475_v7, %v1476_v6  ;;  %1257 = vmatprep.mubr.msk.bf16.mxu1 %vm1898_vm3, %v1897_v12 }
 0x3e5   : > { %v820_v9 = vpack.c.bf16 %v819_v8, %v819_v8 }
 0x3e7   : > { %1264 = vmatmul.mubr.msk.bf16.vlgmr.msra.gmra.mrb[4].mxu0 %vm676_vm5, %v820_v9 }
 0x3e8   : > { %1275 = vmatprep.mubr.msk.bf16.mxu0 %vm1898_vm3, %v1897_v12  ;;  %1274 = vmatpush3.bf16.msra.mxu0 %v1479_v39 }
 0x4b6   : > { %v717_v11 = vpop.f32.mrb[0].mxu1 }
 0x4b7   : > { %v718_v13 = vadd.f32 %v717_v11, %v651_v10  ;;  %v1253_v14 = vpop.f32.mrb[1].mxu1 }
 0x4b8   : > { %v720_v15 = vpop.f32.mrb[2].mxu1 }
 0x4b9   : > { %v1254_v16 = vpop.f32.mrb[3].mxu1  ;;  %v723_v17 = vsel %vm676_vm5, %v718_v13, -inf }
 0x4ba   : > { %724 = vmax.xlane.f32.xlu0 %v723_v17  ;;  %v858_v18 = vpop.f32.mrb[4].mxu0 }
 0x4bb   : > { %v859_v19 = vadd.f32 %v858_v18, %v651_v10  ;;  %v1265_v20 = vpop.f32.mrb[5].mxu0 }
 0x4bc   : > { %v861_v21 = vpop.f32.mrb[6].mxu0 }
 0x4bd   : > { %v1266_v22 = vpop.f32.mrb[7].mxu0  ;;  %v864_v24 = vsel %vm676_vm5, %v859_v19, -inf }
 0x4be   : > { %865 = vmax.xlane.f32.xlu1 %v864_v24 }
 0x4d0   : > { %735 = vrot.lane.b32.xlu0 %v607_v25, %s1907_s28 }
 0x547   : > { %v725_v26 = vpop.xlane.xlu0 %724 }
 0x548   : > { %v726_v27 = vsub.f32 %v718_v13, %v725_v26 }
 0x54a   : > { %v727_v28 = vmul.f32 1.442695, %v726_v27 }
 0x54b   : > { %v736_v29 = vpop.permute.xlu0 %735  ;;  %v866_v30 = vpop.xlane.xlu1 %865 }
 0x54c   : > { %1480 = vpow2.f32 %v727_v28  ;;  %v742_v31 = vsel %vm740_vm6, %v736_v29, 0  ;;  %v867_v32 = vsub.f32 %v859_v19, %v866_v30 }
 0x54d   : > { %1256 = vmatpush3.bf16.msra.mxu1 %v742_v31 }
 0x54e   : > { %v868_v33 = vmul.f32 1.442695, %v867_v32  ;;  %1267 = vmatprep.subr.bf16.mxu1 %v1897_v12 }
 0x550   : > { %1482 = vpow2.f32 %v868_v33 }
 0x556   : > { %v1481_v34 = vpop.eup %1480 }
 0x557   : > { %v733_v35 = vpack.c.bf16 %v1481_v34, %v1481_v34  ;;  %v729_v37 = vsel %vm676_vm5, %v1481_v34, 0.0 }
 0x559   : > { %1258 = vmatmul.mubr.msk.bf16.vlgmr.msra.gmra.mrb[4].mxu1 %vm676_vm5, %v733_v35 }
 0x55a   : > { %v1483_v23 = vpop.eup %1482  ;;  %1268 = vmatpush3.bf16.msra.mxu1 %v742_v31  ;;  %1269 = vmatprep.mubr.msk.bf16.mxu1 %vm1898_vm3, %v1897_v12 }
 0x55b   : > { %v870_v36 = vsel %vm676_vm5, %v1483_v23, 0.0  ;;  %v874_v38 = vpack.c.bf16 %v1483_v23, %v1483_v23 }
 0x55c   : > { %871 = vadd.xlane.f32.xlu1 %v870_v36 }
 0x560   : > { %730 = vadd.xlane.f32.xlu1 %v729_v37 }
 0x561   : > { %1270 = vmatmul.mubr.msk.bf16.vlgmr.msra.gmra.mrb[8].mxu1 %vm676_vm5, %v874_v38 }
 0x5e9   : > { %v872_v40 = vpop.xlane.xlu1 %871 }
 0x5ea   : > { %1484 = vrcp.f32 %v872_v40 }
 0x5ed   : > { %v731_v50 = vpop.xlane.xlu1 %730 }
 0x5ee   : > { %1486 = vrcp.f32 %v731_v50 }
 0x5f4   : > { %v1485_v45 = vpop.eup %1484 }
 0x5f8   : > { %v1487_v51 = vpop.eup %1486 }
 0x62c   : > { %v778_v41 = vpop.f32.mrb[4].mxu1 }
 0x62d   : > { %v1259_v42 = vpop.f32.mrb[5].mxu1  ;;  %v784_v52 = vmul.f32 %v1487_v51, %v778_v41 }
 0x62e   : > { %v781_v43 = vpop.f32.mrb[6].mxu1 }
 0x62f   : > { %v1260_v44 = vpop.f32.mrb[7].mxu1 }
 0x634   : > { %v912_v12 = vpop.f32.mrb[8].mxu1 }
 0x635   : > { %v918_v46 = vmul.f32 %v1485_v45, %v912_v12  ;;  %v1271_v47 = vpop.f32.mrb[9].mxu1 }
 0x636   : > { %v915_v48 = vpop.f32.mrb[10].mxu1 }
 0x637   : > { %v1272_v49 = vpop.f32.mrb[11].mxu1  ;;  %920 = vrot.lane.b32.xlu1 %v918_v46, %s1902_s6 }
 0x6a9   : > { %v921_v53 = vpop.permute.xlu1 %920 }
 0x6aa   : > { %v923_v54 = vsel %vm676_vm5, %v784_v52, %v921_v53 }
 0x6ab   : > { %v924_v55 = vpack.c.bf16 %v923_v54, %v923_v54 }
 0x6ad   : > { %1276 = vmatmul.mubr.msk.bf16.vlgmr.msra.gmra.mrb[8].mxu0 %vm934_vm7, %v924_v55 }
 0x77d   : > { %983 = sbr.rel (%p1221_p2) target bundleno = 1932 (0x78c), region = 100 }
 0x780   : > { %v972_v57 = vpop.f32.mrb[8].mxu0 }
 0x781   : > { %v978_v58 = vadd.f32 %v972_v57, %v925_v56  ;;  %v1277_v59 = vpop.f32.mrb[9].mxu0 }
 0x782   : > { %v975_v60 = vpop.f32.mrb[10].mxu0 }
 0x783   : > { %979 = vst.msk [vmem:[#allocation3] sm:$0xff] %vm557_vm2, %v978_v58  ;;  %v1278_v61 = vpop.f32.mrb[11].mxu0 }
 0x78a   : > { %v984_v62 = vld [vmem:[#allocation3] sm:$0xff] }
 0x78b   : > { %985 = vst.msk [vmem:[%s2405_s2] sm:$0xff] %vm557_vm2, %v984_v62 }
 0x78c PF: > { %s2632_s0 = sld [smem:[#allocation27_spill]]  ;;  %s2633_s9 = sld [smem:[#allocation44_spill]] }
 0x78d   : > { %s1000_s27 = sshll.u32 %s2405_s2, 4  ;;  %s987_s4 = scalar_lea.sflag [#allocation6], %s2373_s17  ;;  %s1001_s27 = int_to_ptr.vmem [resolvable:$true] %s1000_s27 }
 0x78e   : > { %s1746_s20 = scalar_lea.vmem %s1001_s27, 128  ;;  %p2634_p9 = scmp.ne.s32.totalorder %s2607_s16, 0 }
 0x78f   : > { %p1747_p8 = scmp.ne.s32.totalorder %s1001_s27, %s1746_s20  ;;  %s1908_s30 = smov [#allocation19]  }
 0x790   : > { %s1750_s23 = sshll.u32 %s1908_s30, 4  ;;  %s1751_s23 = int_to_ptr.vmem [resolvable:$false] %s1750_s23 }
 0x791   : > { %p1748_p3 = pnand %p1747_p8, %p2634_p9  ;;  %s1752_s6 = scalar_lea.vmem %s1751_s23, 256 }
 0x792   : > { %s1223_s8 = sshll.u32 %s2632_s0, 7  ;;  %p1753_p7 = scmp.lt.s32.totalorder %s1001_s27, %s1751_s23 }
 0x793   : > { %s2478_s7 = scalar_lea.hbm %s2633_s9, %s1223_s8  ;;  %p1749_p6 = pneg %p1748_p3 }
 0x794   : > { %p1754_p1 = scmp.lt.s32.totalorder %s1752_s6, %s1746_s20 }
 0x796   : > { %p1755_p12 = por %p1754_p1, %p1753_p7 }
 0x798   : > { %p1756_p11 = pnand %p1755_p12, %p1749_p6 }
 0x79a   : > { %1759 = shalt.err (!%p1756_p11)
}
 0x79b   : > { %s1760_s17 = scalar_lea.hbm %s2478_s7, 128  ;;  %s1764_s24 = scalar_lea.hbm %s2633_s9, 256 }
 0x79c   : > { %p1761_p10 = scmp.ne.s32.totalorder %s2478_s7, %s1760_s17  ;;  %p1765_p4 = scmp.lt.u32.totalorder %s2478_s7, %s2633_s9 }
 0x79d   : > { %p1766_p5 = scmp.lt.u32.totalorder %s1764_s24, %s1760_s17  ;;  %p1768_p8 = scmp.lt.u32.totalorder %s1760_s17, %s2478_s7 }
 0x79e   : > { %p1762_p0 = pnand %p1761_p10, %p2634_p9 }
 0x79f   : > { %p1767_p2 = por %p1766_p5, %p1765_p4 }
 0x7a0   : > { %p1763_p13 = pneg %p1762_p0 }
 0x7a1   : > { %p1769_p3 = por %p1768_p8, %p1767_p2 }
 0x7a3   : > { %p1770_p6 = pnand %p1769_p3, %p1763_p13 }
 0x7a5   : > { %1773 = shalt.err (!%p1770_p6)
}
 0x7a6   : > { %1309 = dma.vmem_to_hbm [thread:$0]  (%p2634_p9), %s1001_s27, 128, %s2478_s7, %s987_s4  }
 0x7a7 PF: > { %p1357_p7 = scmp.ge.s32.totalorder %s1884_s19, 2  ;;  %s1012_s28 = sand.u32 1, %s1856_s12  }
 0x7a8   : > { %p2635_p1 = scmp.ne.s32.totalorder %s2610_s21, 0  ;;  %s1013_s15 = scalar_lea.sflag [#allocation6], %s1012_s28 }
 0x7aa   : > { %p1341_p12 = pnand %p1357_p7, %p2635_p1 }
 0x7ac   : > { %1839 = dma.done.wait (!%p1341_p12), %s1013_s15, 128  }
 0x7ad   : > { %1841 = vsyncadd (!%p1341_p12), %s1013_s15, 4294967168  ;;  %s31_s19 = sadd.s32 1, %s1884_s19   ;;  %s2636_s16 = sld [smem:[#allocation34_spill]] }
 0x7ae   : > { %p28_p11 = scmp.ge.s32.totalorder %s31_s19, 6   ;;  %s2637_s15 = sld [smem:[#allocation28_spill]] }
 0x7af   : > { %s2638_s0 = sld [smem:[#allocation29_spill]]  ;;  %s2639_s17 = sld [smem:[#allocation32_spill]] }
 0x7b0   : > { %s2640_s18 = sld [smem:[#allocation33_spill]]  ;;  %s2641_s30 = smov %s1848_s10 }
 0x7b1   : > { %s2642_s10 = smov %s1852_s11  ;;  %s2643_s11 = smov %s2280_s3 }
 0x7b2   : > { %s2644_s12 = smov %s1860_s13  ;;  %s2645_s13 = smov %s1864_s14 }
 0x7b3   : > { %s2646_s14 = smov %s2636_s16  ;;  %30 = sbr.rel (!%p28_p11) target bundleno = 25 (0x19), region = 157 }
 0x7b5   : > { %s2647_s16 = smov %s2638_s0 }
 0x7ba   :  { %1018 = vsyncpa [#allocation5], 1 }
 0x7bb   :  { %1020 = vsyncpa [#allocation5 + $0x1], 1 }
 0x7bc   :  { %1021 = vsyncpa [#allocation8], 1 }
 0x7bd   :  { %1022 = vsyncpa [#allocation11], 1 }
 0x7be   :  { %1023 = vsyncpa [#allocation14], 1 }
 0x7bf   :  { %1024 = vsyncpa [#allocation17], 1 }
 0x7c0   :  { %1026 = vsyncpa [#allocation17 + $0x1], 1 }
 0x7c1   :  { %1027 = vsyncpa [#allocation6], 1 }
 0x7c2   :  { %1029 = vsyncpa [#allocation6 + $0x1], 1 }

</bundles_post_ra>
